<compile_context>
chip_gen: v7x
topology: tpu7x:2x2x1
jax: 0.10.0
libtpu: 0.0.40
codegen_flags: <defaults>
</compile_context>

<pallas_src>
import numpy as np
import jax
import jax.numpy as jnp
from jax.experimental import pallas as pl
from jax.experimental.pallas import tpu as pltpu

N_HEADS = 4
DIM = 32
HEAD_DIM = DIM // N_HEADS
EXP = N_HEADS * N_HEADS * HEAD_DIM   # 128: expanded (h, t, d) lane layout
SEQ = 8

# ---- host-side index / selector construction (exact 0/1 gathers) -----------
_J = np.arange(EXP)
_H = _J // (N_HEADS * HEAD_DIM)          # h(J)
_T = (_J // HEAD_DIM) % N_HEADS          # t(J)
_D = _J % HEAD_DIM                       # d(J)
_COL_Q = _H * HEAD_DIM + _D              # QE[s, J]   = q[s, h*Dh + d]
_COL_KV = _T * HEAD_DIM + _D             # KE/VE[s,J] = k/v[s, t*Dh + d]
_C = ((_H * N_HEADS + _T)[:, None]
      == np.arange(N_HEADS * N_HEADS)[None, :]).astype(np.float32)  # (128, 16)


def mha_kernel(x_ref, w_in_ref, c_ref, e_ref, w_out_ref, o_ref):
    # Fused expanded projection: QE | KE | VE in one MXU pass.
    qkv = jnp.dot(x_ref[...], w_in_ref[...],
                  preferred_element_type=jnp.float32)          # (Ts, 3*128) f32
    qe = qkv[:, 0 * EXP:1 * EXP]                               # (Ts, 128)
    ke = qkv[:, 1 * EXP:2 * EXP]                               # (Ts, 128)
    ve = qkv[:, 2 * EXP:3 * EXP]                               # (Ts, 128)

    # scores[s, h*4+t] = sum_d q3[s,h,d] * k3[s,t,d] : one multiply + one matmul.
    prod = (qe * ke).astype(jnp.bfloat16)                      # (Ts, 128)
    scores = jnp.dot(prod, c_ref[...],
                     preferred_element_type=jnp.float32)       # (Ts, 16)

    # Per-head numerically-stable softmax over the t axis (4 lanes per head).
    ws = []
    for h in range(N_HEADS):
        sh = scores[:, h * N_HEADS:(h + 1) * N_HEADS]          # (Ts, 4)
        m = jnp.max(sh, axis=1, keepdims=True)
        e = jnp.exp(sh - m)
        inv = pl.reciprocal(jnp.sum(e, axis=1, keepdims=True), approx=True)
        ws.append(e * inv)
    w16 = jnp.concatenate(ws, axis=1).astype(jnp.bfloat16)     # (Ts, 16)

    # Broadcast attention weights back to the (h, t, d) layout, weight V, and
    # fuse head-recombination + output projection into one matmul.
    attn = jnp.dot(w16, e_ref[...],
                   preferred_element_type=jnp.float32)         # (Ts, 128)
    y = (attn * ve).astype(jnp.bfloat16)                       # (Ts, 128)
    o_ref[...] = jnp.dot(
        y, w_out_ref[...], preferred_element_type=jnp.float32
    ).astype(o_ref.dtype)


def multi_head_attention(x, wq, wk, wv, wo, *, block_tokens=256):
    S, D = x.shape
    assert D == DIM

    # Pre-expanded weights (exact column/row gathers; bf16 MXU operands).
    w_in = jnp.concatenate(
        [wq[:, _COL_Q], wk[:, _COL_KV], wv[:, _COL_KV]], axis=1
    ).astype(jnp.bfloat16)                                     # (D, 3*128)
    w_out = wo[_COL_Q, :].astype(jnp.bfloat16)                 # (128, D)
    sel_c = jnp.asarray(_C, jnp.bfloat16)                      # (128, 16)
    sel_e = jnp.asarray(_C.T, jnp.bfloat16)                    # (16, 128)
    x_bf = x.astype(jnp.bfloat16)

    # Token tiling: amortizes launch/DMA when S is large; grid=(1,) at S=8.
    tile_s = block_tokens if S % block_tokens == 0 else S
    grid = (S // tile_s,)
    resident = lambda i: (0, 0)

    return pl.pallas_call(
        mha_kernel,
        out_shape=jax.ShapeDtypeStruct((S, D), jnp.float32),
        grid=grid,
        in_specs=[
            pl.BlockSpec((tile_s, D), lambda i: (i, 0)),
            pl.BlockSpec((D, 3 * EXP), resident),
            pl.BlockSpec((EXP, N_HEADS * N_HEADS), resident),
            pl.BlockSpec((N_HEADS * N_HEADS, EXP), resident),
            pl.BlockSpec((EXP, D), resident),
        ],
        out_specs=pl.BlockSpec((tile_s, D), lambda i: (i, 0)),
        compiler_params=pltpu.CompilerParams(
            dimension_semantics=("parallel",)),
    )(x_bf, w_in, sel_c, sel_e, w_out)


if __name__ == "__main__":
    key = jax.random.PRNGKey(0)
    kx, kq, kk, kv, ko = jax.random.split(key, 5)

    # Deterministic synthetic parameters (module uses torch.rand(dim, dim)).
    x = jax.random.uniform(kx, (SEQ, DIM), jnp.float32) * 0.05
    wq = jax.random.uniform(kq, (DIM, DIM), jnp.float32)
    wk = jax.random.uniform(kk, (DIM, DIM), jnp.float32)
    wv = jax.random.uniform(kv, (DIM, DIM), jnp.float32)
    wo = jax.random.uniform(ko, (DIM, DIM), jnp.float32)

    out = jax.block_until_ready(multi_head_attention(x, wq, wk, wv, wo))

    # Pure-JAX reference mirroring the PyTorch forward exactly (f32).
    def ref(xv):
        Q = (xv @ wq).reshape(-1, N_HEADS, HEAD_DIM)
        K = (xv @ wk).reshape(-1, N_HEADS, HEAD_DIM)
        V = (xv @ wv).reshape(-1, N_HEADS, HEAD_DIM)
        attn = jax.nn.softmax(jnp.einsum("shd,std->sht", Q, K), axis=2)
        y = jnp.einsum("sht,std->shd", attn, V)
        return y.reshape(-1, N_HEADS * HEAD_DIM) @ wo

    expected = ref(x)
    assert out.shape == expected.shape
    assert jnp.allclose(out, expected, rtol=5e-2, atol=5e-2), float(
        jnp.max(jnp.abs(out - expected))
    )
    print("KERNEL_OK")
</pallas_src>

<mosaic_0001>
module attributes {stable_mosaic.version = 11 : i64} {
  func.func @mha_kernel(%arg0: i32, %arg1: memref<8x32xbf16, #tpu.memory_space<vmem>>, %arg2: memref<32x384xbf16, #tpu.memory_space<vmem>>, %arg3: memref<128x16xbf16, #tpu.memory_space<vmem>>, %arg4: memref<16x128xbf16, #tpu.memory_space<vmem>>, %arg5: memref<128x32xbf16, #tpu.memory_space<vmem>>, %arg6: memref<8x32xf32, #tpu.memory_space<vmem>>) attributes {dimension_semantics = [#tpu.dimension_semantics<parallel>], iteration_bounds = array<i64: 1>, scalar_prefetch = 0 : i64, scratch_operands = 0 : i64, tpu.core_type = #tpu.core_type<tc>, window_params = [{transform_indices = @transform_0, window_bounds = array<i64: 8, 32>}, {pipeline_mode = #tpu.pipeline_mode<synchronous>, transform_indices = @transform_1, window_bounds = array<i64: 32, 384>}, {pipeline_mode = #tpu.pipeline_mode<synchronous>, transform_indices = @transform_2, window_bounds = array<i64: 128, 16>}, {pipeline_mode = #tpu.pipeline_mode<synchronous>, transform_indices = @transform_3, window_bounds = array<i64: 16, 128>}, {pipeline_mode = #tpu.pipeline_mode<synchronous>, transform_indices = @transform_4, window_bounds = array<i64: 128, 32>}, {transform_indices = @transform_5, window_bounds = array<i64: 8, 32>}]} {
    %c0 = arith.constant 0 : index
    %c0_0 = arith.constant 0 : index
    %0 = vector.load %arg1[%c0, %c0_0] : memref<8x32xbf16, #tpu.memory_space<vmem>>, vector<8x32xbf16>
    %c0_1 = arith.constant 0 : index
    %c0_2 = arith.constant 0 : index
    %1 = vector.load %arg2[%c0_1, %c0_2] : memref<32x384xbf16, #tpu.memory_space<vmem>>, vector<32x384xbf16>
    %cst = arith.constant dense<0.000000e+00> : vector<8x384xf32>
    %2 = tpu.matmul %0, %1, %cst {dimension_numbers = #tpu.dot_dimension_numbers<[1], [0], [0], [1], [0, 0, 1, 1], [], []>} : vector<8x32xbf16>, vector<32x384xbf16>, vector<8x384xf32> -> vector<8x384xf32>
    %3 = vector.extract_strided_slice %2 {offsets = [0, 0], sizes = [8, 128], strides = [1, 1]} : vector<8x384xf32> to vector<8x128xf32>
    %4 = vector.extract_strided_slice %2 {offsets = [0, 128], sizes = [8, 128], strides = [1, 1]} : vector<8x384xf32> to vector<8x128xf32>
    %5 = vector.extract_strided_slice %2 {offsets = [0, 256], sizes = [8, 128], strides = [1, 1]} : vector<8x384xf32> to vector<8x128xf32>
    %6 = arith.mulf %3, %4 : vector<8x128xf32>
    %7 = arith.truncf %6 : vector<8x128xf32> to vector<8x128xbf16>
    %c0_3 = arith.constant 0 : index
    %c0_4 = arith.constant 0 : index
    %8 = vector.load %arg3[%c0_3, %c0_4] : memref<128x16xbf16, #tpu.memory_space<vmem>>, vector<128x16xbf16>
    %cst_5 = arith.constant dense<0.000000e+00> : vector<8x16xf32>
    %9 = tpu.matmul %7, %8, %cst_5 {dimension_numbers = #tpu.dot_dimension_numbers<[1], [0], [0], [1], [0, 0, 1, 1], [], []>} : vector<8x128xbf16>, vector<128x16xbf16>, vector<8x16xf32> -> vector<8x16xf32>
    %10 = vector.extract_strided_slice %9 {offsets = [0, 0], sizes = [8, 4], strides = [1, 1]} : vector<8x16xf32> to vector<8x4xf32>
    %cst_6 = arith.constant dense<0xFF800000> : vector<8xf32>
    %11 = vector.multi_reduction <maximumf>, %10, %cst_6 [1] : vector<8x4xf32> to vector<8xf32>
    %12 = vector.shape_cast %11 : vector<8xf32> to vector<8x1xf32>
    %13 = vector.broadcast %12 : vector<8x1xf32> to vector<8x4xf32>
    %14 = arith.subf %10, %13 : vector<8x4xf32>
    %15 = math.exp %14 : vector<8x4xf32>
    %cst_7 = arith.constant dense<0.000000e+00> : vector<8xf32>
    %16 = vector.multi_reduction <add>, %15, %cst_7 [1] : vector<8x4xf32> to vector<8xf32>
    %17 = vector.shape_cast %16 : vector<8xf32> to vector<8x1xf32>
    %18 = tpu.reciprocal %17 {approx = true} : vector<8x1xf32> -> vector<8x1xf32>
    %19 = vector.broadcast %18 : vector<8x1xf32> to vector<8x4xf32>
    %20 = arith.mulf %15, %19 : vector<8x4xf32>
    %21 = vector.extract_strided_slice %9 {offsets = [0, 4], sizes = [8, 4], strides = [1, 1]} : vector<8x16xf32> to vector<8x4xf32>
    %cst_8 = arith.constant dense<0xFF800000> : vector<8xf32>
    %22 = vector.multi_reduction <maximumf>, %21, %cst_8 [1] : vector<8x4xf32> to vector<8xf32>
    %23 = vector.shape_cast %22 : vector<8xf32> to vector<8x1xf32>
    %24 = vector.broadcast %23 : vector<8x1xf32> to vector<8x4xf32>
    %25 = arith.subf %21, %24 : vector<8x4xf32>
    %26 = math.exp %25 : vector<8x4xf32>
    %cst_9 = arith.constant dense<0.000000e+00> : vector<8xf32>
    %27 = vector.multi_reduction <add>, %26, %cst_9 [1] : vector<8x4xf32> to vector<8xf32>
    %28 = vector.shape_cast %27 : vector<8xf32> to vector<8x1xf32>
    %29 = tpu.reciprocal %28 {approx = true} : vector<8x1xf32> -> vector<8x1xf32>
    %30 = vector.broadcast %29 : vector<8x1xf32> to vector<8x4xf32>
    %31 = arith.mulf %26, %30 : vector<8x4xf32>
    %32 = vector.extract_strided_slice %9 {offsets = [0, 8], sizes = [8, 4], strides = [1, 1]} : vector<8x16xf32> to vector<8x4xf32>
    %cst_10 = arith.constant dense<0xFF800000> : vector<8xf32>
    %33 = vector.multi_reduction <maximumf>, %32, %cst_10 [1] : vector<8x4xf32> to vector<8xf32>
    %34 = vector.shape_cast %33 : vector<8xf32> to vector<8x1xf32>
    %35 = vector.broadcast %34 : vector<8x1xf32> to vector<8x4xf32>
    %36 = arith.subf %32, %35 : vector<8x4xf32>
    %37 = math.exp %36 : vector<8x4xf32>
    %cst_11 = arith.constant dense<0.000000e+00> : vector<8xf32>
    %38 = vector.multi_reduction <add>, %37, %cst_11 [1] : vector<8x4xf32> to vector<8xf32>
    %39 = vector.shape_cast %38 : vector<8xf32> to vector<8x1xf32>
    %40 = tpu.reciprocal %39 {approx = true} : vector<8x1xf32> -> vector<8x1xf32>
    %41 = vector.broadcast %40 : vector<8x1xf32> to vector<8x4xf32>
    %42 = arith.mulf %37, %41 : vector<8x4xf32>
    %43 = vector.extract_strided_slice %9 {offsets = [0, 12], sizes = [8, 4], strides = [1, 1]} : vector<8x16xf32> to vector<8x4xf32>
    %cst_12 = arith.constant dense<0xFF800000> : vector<8xf32>
    %44 = vector.multi_reduction <maximumf>, %43, %cst_12 [1] : vector<8x4xf32> to vector<8xf32>
    %45 = vector.shape_cast %44 : vector<8xf32> to vector<8x1xf32>
    %46 = vector.broadcast %45 : vector<8x1xf32> to vector<8x4xf32>
    %47 = arith.subf %43, %46 : vector<8x4xf32>
    %48 = math.exp %47 : vector<8x4xf32>
    %cst_13 = arith.constant dense<0.000000e+00> : vector<8xf32>
    %49 = vector.multi_reduction <add>, %48, %cst_13 [1] : vector<8x4xf32> to vector<8xf32>
    %50 = vector.shape_cast %49 : vector<8xf32> to vector<8x1xf32>
    %51 = tpu.reciprocal %50 {approx = true} : vector<8x1xf32> -> vector<8x1xf32>
    %52 = vector.broadcast %51 : vector<8x1xf32> to vector<8x4xf32>
    %53 = arith.mulf %48, %52 : vector<8x4xf32>
    %54 = tpu.concatenate %20, %31, %42, %53 in 1 : vector<8x4xf32>, vector<8x4xf32>, vector<8x4xf32>, vector<8x4xf32> -> vector<8x16xf32>
    %55 = arith.truncf %54 : vector<8x16xf32> to vector<8x16xbf16>
    %c0_14 = arith.constant 0 : index
    %c0_15 = arith.constant 0 : index
    %56 = vector.load %arg4[%c0_14, %c0_15] : memref<16x128xbf16, #tpu.memory_space<vmem>>, vector<16x128xbf16>
    %cst_16 = arith.constant dense<0.000000e+00> : vector<8x128xf32>
    %57 = tpu.matmul %55, %56, %cst_16 {dimension_numbers = #tpu.dot_dimension_numbers<[1], [0], [0], [1], [0, 0, 1, 1], [], []>} : vector<8x16xbf16>, vector<16x128xbf16>, vector<8x128xf32> -> vector<8x128xf32>
    %58 = arith.mulf %57, %5 : vector<8x128xf32>
    %59 = arith.truncf %58 : vector<8x128xf32> to vector<8x128xbf16>
    %c0_17 = arith.constant 0 : index
    %c0_18 = arith.constant 0 : index
    %60 = vector.load %arg5[%c0_17, %c0_18] : memref<128x32xbf16, #tpu.memory_space<vmem>>, vector<128x32xbf16>
    %cst_19 = arith.constant dense<0.000000e+00> : vector<8x32xf32>
    %61 = tpu.matmul %59, %60, %cst_19 {dimension_numbers = #tpu.dot_dimension_numbers<[1], [0], [0], [1], [0, 0, 1, 1], [], []>} : vector<8x128xbf16>, vector<128x32xbf16>, vector<8x32xf32> -> vector<8x32xf32>
    %c0_20 = arith.constant 0 : index
    %c0_21 = arith.constant 0 : index
    %62 = vector.load %arg6[%c0_20, %c0_21] : memref<8x32xf32, #tpu.memory_space<vmem>>, vector<8x32xf32>
    tpu.vector_store %arg6[%c0_20, %c0_21], %61 {strides = array<i32>} : memref<8x32xf32, #tpu.memory_space<vmem>>, vector<8x32xf32>,
    return
  }
  func.func @transform_0(%arg0: i32) -> (i32, i32) {
    %c0_i32 = arith.constant 0 : i32
    %c0_i32_0 = arith.constant 0 : i32
    return %arg0, %c0_i32 : i32, i32
  }
  func.func @transform_1(%arg0: i32) -> (i32, i32) {
    %c0_i32 = arith.constant 0 : i32
    %c0_i32_0 = arith.constant 0 : i32
    %c0_i32_1 = arith.constant 0 : i32
    return %c0_i32, %c0_i32_0 : i32, i32
  }
  func.func @transform_2(%arg0: i32) -> (i32, i32) {
    %c0_i32 = arith.constant 0 : i32
    %c0_i32_0 = arith.constant 0 : i32
    %c0_i32_1 = arith.constant 0 : i32
    return %c0_i32, %c0_i32_0 : i32, i32
  }
  func.func @transform_3(%arg0: i32) -> (i32, i32) {
    %c0_i32 = arith.constant 0 : i32
    %c0_i32_0 = arith.constant 0 : i32
    %c0_i32_1 = arith.constant 0 : i32
    return %c0_i32, %c0_i32_0 : i32, i32
  }
  func.func @transform_4(%arg0: i32) -> (i32, i32) {
    %c0_i32 = arith.constant 0 : i32
    %c0_i32_0 = arith.constant 0 : i32
    %c0_i32_1 = arith.constant 0 : i32
    return %c0_i32, %c0_i32_0 : i32, i32
  }
  func.func @transform_5(%arg0: i32) -> (i32, i32) {
    %c0_i32 = arith.constant 0 : i32
    %c0_i32_0 = arith.constant 0 : i32
    return %arg0, %c0_i32 : i32, i32
  }
}

</mosaic_0001>

<bundles_post_ra>
// kernel: tpu_custom_call.1
= control target key start
LH: loop header
LB: loop body
LE: loop exit
PB: predicated region body
PF: predicated region fallthrough
CT: control target
= control target key end

     0   :  { %v668_v2 = vmov 0   ;;  %v669_v4 = vmov 0.0   ;;  %vm63_vm0 = vcmask 261120   ;;  %s829_s0 = inlined_call_operand.vmem [shape: bf16[8,32], index: 0, kind: input, shape index: {}]   ;;  %s830_s1 = inlined_call_operand.vmem [shape: bf16[32,384], index: 1, kind: input, shape index: {}]   ;;  %s831_s2 = inlined_call_operand.vmem [shape: bf16[128,16], index: 2, kind: input, shape index: {}]   ;;  %s832_s3 = inlined_call_operand.vmem [shape: bf16[16,128], index: 3, kind: input, shape index: {}]   ;;  %s833_s4 = inlined_call_operand.vmem [shape: bf16[128,32], index: 4, kind: input, shape index: {}]   ;;  %s834_s5 = inlined_call_operand.hbm [shape: f32[8,32], index: 5, kind: output, shape index: {}]  }
   0x1   :  { %v603_v0 = vld [vmem:[%s830_s1 + $0x4] ss:$12 sps:$4 sm:$0xff]   ;;  %v605_v1 = vld [vmem:[%s830_s1] ss:$12 sps:$4 sm:$0xff]   ;;  %99 = vmatprep.mubr.bf16.mxu0 %v668_v2  ;;  %v606_v3 = vld [vmem:[%s830_s1 + $0x1c] ss:$12 sps:$4 sm:$0xff]   ;;  %542 = vmatprep.subr.bf16.mxu1 %v669_v4 }
   0x2   :  { %67 = vmatprep.subr.bf16.mxu0 %v603_v0  ;;  %v608_v5 = vld [vmem:[%s830_s1 + $0x18] ss:$12 sps:$4 sm:$0xff]   ;;  %v721_v6 = vld [vmem:[%s829_s0] sm:$0xf]  ;;  %v610_v8 = vld [vmem:[%s831_s2 + $0x8] sm:$0xff]  }
   0x3   :  { %68 = vmatpush1.bf16.msra.mxu0 %v605_v1  ;;  %v609_v7 = vld [vmem:[%s831_s2] sm:$0xff]   ;;  %v611_v9 = vld [vmem:[%s831_s2 + $0x10] sm:$0xff]  }
   0x4   :  { %69 = vmatprep.subr.bf16.mxu0 %v606_v3 }
   0x7   :  { %70 = vmatpush1.bf16.msra.mxu0 %v608_v5 }
   0x8   :  { %550 = vmatprep.subr.bf16.mxu0 %v669_v4 }
   0xa   :  { %499 = vmatmul.mubr.msk.bf16.vlgmr.msra.gmra.mrb[0].mxu0 %vm63_vm0, %v721_v6 }
   0xb   :  { %551 = vmatpush3.bf16.msra.mxu0 %v609_v7 }
   0xc   :  { %552 = vmatprep.subr.bf16.mxu0 %v669_v4 }
   0xf   :  { %553 = vmatpush3.bf16.msra.mxu0 %v610_v8 }
  0x10   :  { %554 = vmatprep.subr.bf16.mxu0 %v669_v4 }
  0x11   :  { %10 = vsyncpa [#allocation3], 0  ;;  %v612_v10 = vld [vmem:[%s831_s2 + $0x18] sm:$0xff]   ;;  %v613_v11 = vld [vmem:[%s831_s2 + $0x20] sm:$0xff]   ;;  %vm670_vm1 = vmmov 0   ;;  %vm298_vm2 = vcmask 130144  }
  0x12   :  { %v614_v12 = vld [vmem:[%s831_s2 + $0x28] sm:$0xff]   ;;  %v615_v13 = vld [vmem:[%s831_s2 + $0x30] sm:$0xff]   ;;  %v616_v14 = vld [vmem:[%s831_s2 + $0x38] sm:$0xff]   ;;  %566 = vmatprep.mubr.msk.bf16.mxu0 %vm670_vm1, %v669_v4  ;;  %546 = vmatprep.mubr.msk.bf16.mxu1 %vm670_vm1, %v669_v4  ;;  %vm266_vm3 = vcmask 64544   ;;  %vm282_vm4 = vcmask 97344   ;;  %vm254_vm5 = vcmask 31744  }
  0x13   :  { %555 = vmatpush3.bf16.msra.mxu0 %v611_v9  ;;  %s671_s2 = smov 124   ;;  %s672_s18 = smov 120   ;;  %v617_v52 = vld [vmem:[%s830_s1 + $0x8] ss:$12 sps:$4 sm:$0xff]   ;;  %v618_v53 = vld [vmem:[%s830_s1 + $0x20] ss:$12 sps:$4 sm:$0xff]  }
  0x14   :  { %556 = vmatprep.subr.bf16.mxu0 %v669_v4  ;;  %s673_s19 = smov 116   ;;  %543 = vmatpush3.bf16.msra.mxu1 %v617_v52  ;;  %v619_v54 = vld [vmem:[%s832_s3] sm:$0xff]   ;;  %vm315_vm6 = vcmask 64512   ;;  %vm317_vm7 = vcmask 97280   ;;  %vm328_vm8 = vcmask 130048   ;;  %v621_v9 = vld [vmem:[%s833_s4 + $0x8] sm:$0xff]  }
  0x15   :  { %544 = vmatprep.subr.bf16.mxu1 %v669_v4  ;;  %v620_v7 = vld [vmem:[%s833_s4] sm:$0xff]   ;;  %s674_s14 = smov [#allocation2]  }
  0x16   :  { %s485_s15 = sshll.u32 %s674_s14, 4  ;;  %s486_s15 = int_to_ptr.vmem [resolvable:$true] %s485_s15 }
  0x17   :  { %557 = vmatpush3.bf16.msra.mxu0 %v612_v10  ;;  %v622_v10 = vld [vmem:[%s833_s4 + $0x10] sm:$0xff]   ;;  %s644_s16 = scalar_lea.vmem %s486_s15, 128  ;;  %p649_p1 = scmp.lt.s32.totalorder %s486_s15, %s486_s15 }
  0x18   :  { %558 = vmatprep.subr.bf16.mxu0 %v669_v4  ;;  %545 = vmatpush3.bf16.msra.mxu1 %v618_v53  ;;  %p645_p0 = scmp.ne.s32.totalorder %s486_s15, %s644_s16  ;;  %p650_p2 = scmp.lt.s32.totalorder %s644_s16, %s644_s16 }
  0x19   :  { %570 = vmatprep.subr.bf16.mxu1 %v669_v4 }
  0x1a   :  { %p651_p3 = por %p650_p2, %p649_p1 }
  0x1b   :  { %559 = vmatpush3.bf16.msra.mxu0 %v613_v11  ;;  %547 = vmatmul.mubr.msk.bf16.vlgmr.msra.gmra.mrb[0].mxu1 %vm63_vm0, %v721_v6  ;;  %v623_v11 = vld [vmem:[%s833_s4 + $0x18] sm:$0xff]  }
  0x1c   :  { %560 = vmatprep.subr.bf16.mxu0 %v669_v4  ;;  %572 = vmatprep.mubr.msk.bf16.mxu1 %vm670_vm1, %v669_v4  ;;  %p652_p4 = pnand %p651_p3, %p645_p0 }
  0x1d   :  { %571 = vmatpush3.bf16.msra.mxu1 %v619_v54 }
  0x1e   :  { %576 = vmatprep.subr.bf16.mxu1 %v669_v4 }
  0x1f   :  { %561 = vmatpush3.bf16.msra.mxu0 %v614_v12  ;;  %v624_v12 = vld [vmem:[%s833_s4 + $0x20] sm:$0xff]  }
  0x20   :  { %562 = vmatprep.subr.bf16.mxu0 %v669_v4 }
  0x23   :  { %563 = vmatpush3.bf16.msra.mxu0 %v615_v13  ;;  %v625_v13 = vld [vmem:[%s833_s4 + $0x28] sm:$0xff]  }
  0x24   :  { %564 = vmatprep.subr.bf16.mxu0 %v669_v4 }
  0x27   :  { %565 = vmatpush3.bf16.msra.mxu0 %v616_v14  ;;  %v626_v14 = vld [vmem:[%s833_s4 + $0x30] sm:$0xff]  }
  0xdd   :  { %v101_v15 = vpop.f32.mrb[0].mxu0 }
  0xde   :  { %v103_v16 = vpop.f32.mrb[1].mxu0 }
  0xdf   :  { %v148_v17 = vmul.f32 %v103_v16, %v101_v15  ;;  %v105_v18 = vpop.f32.mrb[2].mxu0 }
  0xe0   :  { %v106_v19 = vpop.f32.mrb[3].mxu0 }
  0xe1   :  { %v149_v20 = vpack.c.bf16 %v148_v17, %v148_v17  ;;  %v627_v19 = vld [vmem:[%s833_s4 + $0x38] sm:$0xff]  }
  0xe3   :  { %567 = vmatmul.mubr.bf16.vlgmr.msra.gmra.mrb[4].mxu0 %v149_v20 }
  0xee   :  { %v142_v15 = vpop.f32.mrb[0].mxu1 }
  0xef   :  { %v548_v16 = vpop.f32.mrb[1].mxu1 }
  0xf0   :  { %v145_v17 = vpop.f32.mrb[2].mxu1 }
  0xf1   :  { %v549_v18 = vpop.f32.mrb[3].mxu1 }
 0x1b6   :  { %v248_v21 = vpop.f32.mrb[4].mxu0 }
 0x1b7   :  { %v568_v22 = vpop.f32.mrb[5].mxu0  ;;  %v299_v23 = vsel %vm298_vm2, %v248_v21, -inf  ;;  %v267_v24 = vsel %vm266_vm3, %v248_v21, -inf  ;;  %v283_v27 = vsel %vm282_vm4, %v248_v21, -inf  ;;  %v255_v28 = vsel %vm254_vm5, %v248_v21, -inf }
 0x1b8   :  { %300 = vmax.xlane.f32.xlu1 %v299_v23  ;;  %268 = vmax.xlane.f32.xlu0 %v267_v24  ;;  %v251_v25 = vpop.f32.mrb[6].mxu0 }
 0x1b9   :  { %v569_v26 = vpop.f32.mrb[7].mxu0 }
 0x1bc   :  { %284 = vmax.xlane.f32.xlu0 %v283_v27  ;;  %256 = vmax.xlane.f32.xlu1 %v255_v28 }
 0x245   :  { %v269_v29 = vpop.xlane.xlu0 %268  ;;  %v301_v31 = vpop.xlane.xlu1 %300 }
 0x246   :  { %v270_v30 = vsub.f32 %v248_v21, %v269_v29  ;;  %v302_v34 = vsub.f32 %v248_v21, %v301_v31 }
 0x248   :  { %v271_v32 = vmul.f32 1.442695, %v270_v30  ;;  %v303_v37 = vmul.f32 1.442695, %v302_v34 }
 0x249   :  { %v285_v33 = vpop.xlane.xlu0 %284  ;;  %v257_v41 = vpop.xlane.xlu1 %256 }
 0x24a   :  { %v286_v35 = vsub.f32 %v248_v21, %v285_v33  ;;  %628 = vpow2.f32 %v271_v32  ;;  %v258_v42 = vsub.f32 %v248_v21, %v257_v41 }
 0x24c   :  { %v287_v36 = vmul.f32 1.442695, %v286_v35  ;;  %v259_v43 = vmul.f32 1.442695, %v258_v42 }
 0x24e   :  { %630 = vpow2.f32 %v287_v36 }
 0x24f   :  { %632 = vpow2.f32 %v303_v37 }
 0x250   :  { %634 = vpow2.f32 %v259_v43 }
 0x254   :  { %v629_v38 = vpop.eup %628 }
 0x255   :  { %274 = vrot.lane.b32.xlu0 %v629_v38, %s671_s2 }
 0x258   :  { %v631_v39 = vpop.eup %630 }
 0x259   :  { %290 = vrot.lane.b32.xlu1 %v631_v39, %s672_s18  ;;  %v633_v40 = vpop.eup %632 }
 0x25a   :  { %v635_v44 = vpop.eup %634 }
 0x25b   :  { %v261_v45 = vsel %vm254_vm5, %v635_v44, 0.0 }
 0x25d   :  { %306 = vrot.lane.b32.xlu1 %v633_v40, %s673_s19 }
 0x281   :  { %262 = vadd.xlane.f32.xlu1 %v261_v45 }
 0x2c7   :  { %v275_v46 = vpop.permute.xlu0 %274 }
 0x2c8   :  { %v277_v47 = vsel %vm254_vm5, %v275_v46, 0.0 }
 0x2c9   :  { %278 = vadd.xlane.f32.xlu0 %v277_v47 }
 0x2cb   :  { %v291_v48 = vpop.permute.xlu1 %290 }
 0x2cc   :  { %v293_v49 = vsel %vm254_vm5, %v291_v48, 0.0 }
 0x2cd   :  { %294 = vadd.xlane.f32.xlu0 %v293_v49 }
 0x2cf   :  { %v307_v50 = vpop.permute.xlu1 %306 }
 0x2d0   :  { %v309_v51 = vsel %vm254_vm5, %v307_v50, 0.0 }
 0x2d1   :  { %310 = vadd.xlane.f32.xlu0 %v309_v51 }
 0x30e   :  { %v263_v56 = vpop.xlane.xlu1 %262 }
 0x356   :  { %v279_v55 = vpop.xlane.xlu0 %278 }
 0x357   :  { %636 = vrcp.f32 %v279_v55 }
 0x358   :  { %638 = vrcp.f32 %v263_v56 }
 0x35a   :  { %v295_v57 = vpop.xlane.xlu0 %294 }
 0x35b   :  { %640 = vrcp.f32 %v295_v57 }
 0x35e   :  { %v311_v58 = vpop.xlane.xlu0 %310 }
 0x35f   :  { %642 = vrcp.f32 %v311_v58 }
 0x361   :  { %v637_v59 = vpop.eup %636 }
 0x362   :  { %v639_v60 = vpop.eup %638  ;;  %v281_v62 = vmul.f32 %v637_v59, %v629_v38 }
 0x363   :  { %v265_v0 = vmul.f32 %v639_v60, %v635_v44 }
 0x365   :  { %v641_v61 = vpop.eup %640  ;;  %v314_v2 = vsel %vm254_vm5, %v265_v0, %v281_v62 }
 0x366   :  { %v297_v63 = vmul.f32 %v641_v61, %v631_v39 }
 0x368   :  { %v316_v5 = vsel %vm315_vm6, %v314_v2, %v297_v63 }
 0x369   :  { %v643_v1 = vpop.eup %642 }
 0x36a   :  { %v313_v3 = vmul.f32 %v643_v1, %v633_v40 }
 0x36c   :  { %v318_v6 = vsel %vm317_vm7, %v316_v5, %v313_v3 }
 0x36d   :  { %v319_v8 = vpack.c.bf16 %v318_v6, %v318_v6 }
 0x36f   :  { %573 = vmatmul.mubr.msk.bf16.vlgmr.msra.gmra.mrb[4].mxu1 %vm328_vm8, %v319_v8 }
 0x370   :  { %577 = vmatpush3.bf16.msra.mxu1 %v620_v7  ;;  %592 = vmatprep.mubr.msk.bf16.mxu1 %vm670_vm1, %v669_v4 }
 0x371   :  { %578 = vmatprep.subr.bf16.mxu1 %v669_v4 }
 0x374   :  { %579 = vmatpush3.bf16.msra.mxu1 %v621_v9 }
 0x375   :  { %580 = vmatprep.subr.bf16.mxu1 %v669_v4 }
 0x378   :  { %581 = vmatpush3.bf16.msra.mxu1 %v622_v10 }
 0x379   :  { %582 = vmatprep.subr.bf16.mxu1 %v669_v4 }
 0x37c   :  { %583 = vmatpush3.bf16.msra.mxu1 %v623_v11 }
 0x37d   :  { %584 = vmatprep.subr.bf16.mxu1 %v669_v4 }
 0x380   :  { %585 = vmatpush3.bf16.msra.mxu1 %v624_v12 }
 0x381   :  { %586 = vmatprep.subr.bf16.mxu1 %v669_v4 }
 0x384   :  { %587 = vmatpush3.bf16.msra.mxu1 %v625_v13 }
 0x385   :  { %588 = vmatprep.subr.bf16.mxu1 %v669_v4 }
 0x388   :  { %589 = vmatpush3.bf16.msra.mxu1 %v626_v14 }
 0x389   :  { %590 = vmatprep.subr.bf16.mxu1 %v669_v4 }
 0x38c   :  { %591 = vmatpush3.bf16.msra.mxu1 %v627_v19 }
 0x442   :  { %v366_v20 = vpop.f32.mrb[4].mxu1 }
 0x443   :  { %v372_v21 = vmul.f32 %v366_v20, %v142_v15  ;;  %v574_v22 = vpop.f32.mrb[5].mxu1 }
 0x444   :  { %v369_v23 = vpop.f32.mrb[6].mxu1 }
 0x445   :  { %v373_v24 = vpack.c.bf16 %v372_v21, %v372_v21  ;;  %v575_v25 = vpop.f32.mrb[7].mxu1 }
 0x447   :  { %593 = vmatmul.mubr.bf16.vlgmr.msra.gmra.mrb[8].mxu1 %v373_v24 }
 0x51a   :  { %v472_v4 = vpop.f32.mrb[8].mxu1 }
 0x51b   :  { %478 = vst.msk [vmem:[#allocation2] sm:$0xff] %vm63_vm0, %v472_v4  ;;  %v594_v26 = vpop.f32.mrb[9].mxu1 }
 0x51c   :  { %v475_v27 = vpop.f32.mrb[10].mxu1 }
 0x51d   :  { %655 = shalt.err (!%p652_p4)
}
 0x51e   :  { %s656_s2 = scalar_lea.hbm %s834_s5, 128 }
 0x51f   :  { %p657_p5 = scmp.ne.s32.totalorder %s834_s5, %s656_s2  ;;  %p660_p6 = scmp.lt.u32.totalorder %s656_s2, %s834_s5 }
 0x521   :  { %p662_p7 = pnand %p660_p6, %p657_p5 }
 0x523   :  { %665 = shalt.err (!%p662_p7)
}
 0x524   :  { %488 = dma.vmem_to_hbm [thread:$0]  %s486_s15, 128, %s834_s5, [#allocation3]   ;;  %v595_v28 = vpop.f32.mrb[11].mxu1 }
 0x525   :  { %666 = dma.done.wait [#allocation3], 128  }
 0x526   :  { %667 = vsyncadd [#allocation3], 4294967168 }
 0x527   :  { %492 = vsyncpa [#allocation3], 1 }

</bundles_post_ra>
